<compile_context>
chip_gen: v7x
topology: tpu7x:2x2x1
jax: 0.10.0
libtpu: 0.0.40
codegen_flags: <defaults>
</compile_context>

<pallas_src>
import functools

import jax
import jax.numpy as jnp
from jax.experimental import pallas as pl
from jax.experimental.pallas import tpu as pltpu


def _round_up(x: int, m: int) -> int:
    return ((x + m - 1) // m) * m


def _pick_tile(dim: int, max_tile: int, align: int) -> int:
    """Tile <= max_tile, multiple of `align`, minimizing padded waste."""
    r = _round_up(max(dim, 1), align)
    if r <= max_tile:
        return r
    n_chunks = -(-r // max_tile)                 # ceil
    return _round_up(-(-r // n_chunks), align)   # near-equal split


def _multi_core_chip() -> bool:
    """Best-effort detection of a multi-TensorCore chip (v7x)."""
    try:
        dev = jax.devices()[0]
        kind = str(getattr(dev, "device_kind", "")).lower()
        if "v7" in kind:
            return True
        return int(getattr(dev, "num_cores", 1)) > 1
    except Exception:
        return False


def _linear_relu_kernel_f32out(x_ref, w_ref, b_ref, o_ref):
    """f32 output: accumulate directly into the VMEM-resident output block."""
    k = pl.program_id(2)

    @pl.when(k == 0)
    def _init():
        o_ref[...] = jnp.zeros_like(o_ref)

    o_ref[...] += jnp.dot(
        x_ref[...], w_ref[...], preferred_element_type=jnp.float32
    )

    @pl.when(k == pl.num_programs(2) - 1)
    def _finalize():
        # Bias + ReLU exactly once, in place, in the epilogue.
        o_ref[...] = jnp.maximum(o_ref[...] + b_ref[...], 0.0)


def _linear_relu_kernel_acc(x_ref, w_ref, b_ref, o_ref, acc_ref):
    """Narrow output dtypes: keep an f32 VMEM accumulator scratch."""
    k = pl.program_id(2)

    @pl.when(k == 0)
    def _init():
        acc_ref[...] = jnp.zeros_like(acc_ref)

    acc_ref[...] += jnp.dot(
        x_ref[...], w_ref[...], preferred_element_type=jnp.float32
    )

    @pl.when(k == pl.num_programs(2) - 1)
    def _finalize():
        y = acc_ref[...] + b_ref[...]
        o_ref[...] = jnp.maximum(y, 0.0).astype(o_ref.dtype)


@functools.partial(
    jax.jit, static_argnames=("tm_max", "tn_max", "tk_max", "cast_to_bf16")
)
def my_linear(x, weight, bias, *, tm_max=512, tn_max=512, tk_max=1024,
              cast_to_bf16=False):
    """relu(x @ weight + bias) via a tiled Pallas TPU matmul kernel."""
    M, K = x.shape
    Kw, N = weight.shape
    assert K == Kw, "weight first dim must equal x last dim"
    assert bias.shape == (N,)

    out_dtype = x.dtype

    if cast_to_bf16:
        # TODO(synk): bf16 MXU inputs (v6e/v7x fast path) change numerics vs
        # the f32 PyTorch reference; enable only after tolerance sign-off.
        x = x.astype(jnp.bfloat16)
        weight = weight.astype(jnp.bfloat16)

    in_itemsize = jnp.dtype(x.dtype).itemsize

    # MXU/lane-aligned tiles adapted to the problem (multiples of (8,128)).
    tm = _pick_tile(M, tm_max, 8)
    tn = _pick_tile(N, tn_max, 128)
    tk = _pick_tile(K, tk_max, 128)

    # v7x: keep both TensorCores busy -> at least 2 blocks along a parallel
    # axis whenever the problem is big enough to split.
    if _multi_core_chip():
        if (_round_up(M, tm) // tm) * (_round_up(N, tn) // tn) < 2:
            if tn >= 256:
                tn = _round_up(tn // 2, 128)
            elif tm >= 16:
                tm = _round_up(tm // 2, 8)

    Mp, Kp, Np = _round_up(M, tm), _round_up(K, tk), _round_up(N, tn)

    # Pad only when needed (shapes are static under jit -> Python-level ifs).
    # Zero padding is sound: zeros contribute nothing to the dot, padded bias
    # lanes are zero, ReLU(0)=0, and the valid region is sliced out below.
    xp = x if (Mp == M and Kp == K) else (
        jnp.zeros((Mp, Kp), dtype=x.dtype).at[:M, :K].set(x))
    # TODO(synk): in a real model, pad the (static) weight/bias once at
    # parameter-setup time instead of on every forward call.
    wp = weight if (Kp == K and Np == N) else (
        jnp.zeros((Kp, Np), dtype=weight.dtype).at[:K, :N].set(weight))
    bf = bias.astype(jnp.float32)
    bp = (bf.reshape(1, N) if Np == N else
          jnp.zeros((1, Np), dtype=jnp.float32).at[0, :N].set(bf))

    grid = (Mp // tm, Np // tn, Kp // tk)  # reduction (K) axis last

    # VMEM footprint: double-buffered inputs + output (+acc) + bias, plus
    # margin. Cap at 48 MiB so it stays safe on v7x (64 MiB physical per TC)
    # while raising the 16/32 MiB scoped defaults on v5e/v6e.
    needed = (2 * (tm * tk + tk * tn) * in_itemsize
              + 3 * tm * tn * 4 + 2 * tn * 4)
    vmem_limit = min(max(int(needed * 3 // 2) + (8 << 20), 32 << 20), 48 << 20)

    cost = pl.CostEstimate(
        flops=2 * M * K * N,
        bytes_accessed=(in_itemsize * (M * K + K * N)
                        + jnp.dtype(out_dtype).itemsize * M * N + 4 * N),
        transcendentals=0,
    )

    in_specs = [
        pl.BlockSpec((tm, tk), lambda i, j, k: (i, k)),   # lhs
        pl.BlockSpec((tk, tn), lambda i, j, k: (k, j)),   # rhs
        pl.BlockSpec((1, tn), lambda i, j, k: (0, j)),    # bias
    ]
    out_spec = pl.BlockSpec((tm, tn), lambda i, j, k: (i, j))
    cparams = pltpu.CompilerParams(
        dimension_semantics=("parallel", "parallel", "arbitrary"),
        vmem_limit_bytes=vmem_limit,
    )

    if out_dtype == jnp.float32:
        out_padded = pl.pallas_call(
            _linear_relu_kernel_f32out,
            out_shape=jax.ShapeDtypeStruct((Mp, Np), jnp.float32),
            grid_spec=pltpu.PrefetchScalarGridSpec(
                num_scalar_prefetch=0,
                grid=grid,
                in_specs=in_specs,
                out_specs=out_spec,
            ),
            compiler_params=cparams,
            cost_estimate=cost,
        )(xp, wp, bp)
    else:
        out_padded = pl.pallas_call(
            _linear_relu_kernel_acc,
            out_shape=jax.ShapeDtypeStruct((Mp, Np), out_dtype),
            grid_spec=pltpu.PrefetchScalarGridSpec(
                num_scalar_prefetch=0,
                grid=grid,
                in_specs=in_specs,
                out_specs=out_spec,
                scratch_shapes=[pltpu.VMEM((tm, tn), jnp.float32)],
            ),
            compiler_params=cparams,
            cost_estimate=cost,
        )(xp, wp, bp)

    if Mp == M and Np == N:
        return out_padded
    return out_padded[:M, :N]


if __name__ == "__main__":
    # Shapes implied by the module: MyLinear(5, 3) applied to a small batch.
    in_units, units = 5, 3
    batch = 8

    key = jax.random.PRNGKey(0)
    kx, kw, kb = jax.random.split(key, 3)

    x = jax.random.normal(kx, (batch, in_units), dtype=jnp.float32)
    weight = jax.random.normal(kw, (in_units, units), dtype=jnp.float32)
    bias = jax.random.normal(kb, (units,), dtype=jnp.float32)

    out = my_linear(x, weight, bias)
    out = jax.block_until_ready(out)

    # Pure-JAX reference check.
    ref = jnp.maximum(x @ weight + bias, 0.0)
    assert out.shape == (batch, units)
    assert jnp.allclose(out, ref, atol=1e-5, rtol=1e-5)

    print("KERNEL_OK")
</pallas_src>

<mosaic_0001>
module attributes {stable_mosaic.version = 11 : i64} {
  func.func @_linear_relu_kernel_f32out(%arg0: i32, %arg1: i32, %arg2: i32, %arg3: memref<8x128xf32, #tpu.memory_space<vmem>>, %arg4: memref<128x128xf32, #tpu.memory_space<vmem>>, %arg5: memref<1x128xf32, #tpu.memory_space<vmem>>, %arg6: memref<8x128xf32, #tpu.memory_space<vmem>>) attributes {dimension_semantics = [#tpu.dimension_semantics<parallel>, #tpu.dimension_semantics<parallel>, #tpu.dimension_semantics<arbitrary>], iteration_bounds = array<i64: 1, 1, 1>, scalar_prefetch = 0 : i64, scratch_operands = 0 : i64, tpu.core_type = #tpu.core_type<tc>, window_params = [{transform_indices = @transform_0, window_bounds = array<i64: 8, 128>}, {transform_indices = @transform_1, window_bounds = array<i64: 128, 128>}, {transform_indices = @transform_2, window_bounds = array<i64: 1, 128>}, {transform_indices = @transform_3, window_bounds = array<i64: 8, 128>}]} {
    %c0_i32 = arith.constant 0 : i32
    %0 = arith.cmpi eq, %arg2, %c0_i32 : i32
    %1 = arith.extui %0 : i1 to i32
    %c0_i32_0 = arith.constant 0 : i32
    %2 = arith.cmpi ne, %1, %c0_i32_0 : i32
    scf.if %2 {
      %cst_10 = arith.constant 0.000000e+00 : f32
      %12 = vector.broadcast %cst_10 : f32 to vector<8x128xf32>
      %c0_11 = arith.constant 0 : index
      %c0_12 = arith.constant 0 : index
      %13 = vector.load %arg6[%c0_11, %c0_12] : memref<8x128xf32, #tpu.memory_space<vmem>>, vector<8x128xf32>
      tpu.vector_store %arg6[%c0_11, %c0_12], %12 {strides = array<i32>} : memref<8x128xf32, #tpu.memory_space<vmem>>, vector<8x128xf32>,
    } else {
    }
    %c0 = arith.constant 0 : index
    %c0_1 = arith.constant 0 : index
    %3 = vector.load %arg6[%c0, %c0_1] : memref<8x128xf32, #tpu.memory_space<vmem>>, vector<8x128xf32>
    %c0_2 = arith.constant 0 : index
    %c0_3 = arith.constant 0 : index
    %4 = vector.load %arg3[%c0_2, %c0_3] : memref<8x128xf32, #tpu.memory_space<vmem>>, vector<8x128xf32>
    %c0_4 = arith.constant 0 : index
    %c0_5 = arith.constant 0 : index
    %5 = vector.load %arg4[%c0_4, %c0_5] : memref<128x128xf32, #tpu.memory_space<vmem>>, vector<128x128xf32>
    %cst = arith.constant dense<0.000000e+00> : vector<8x128xf32>
    %6 = tpu.matmul %4, %5, %cst {dimension_numbers = #tpu.dot_dimension_numbers<[1], [0], [0], [1], [0, 0, 1, 1], [], []>} : vector<8x128xf32>, vector<128x128xf32>, vector<8x128xf32> -> vector<8x128xf32>
    %7 = arith.addf %3, %6 : vector<8x128xf32>
    %c0_6 = arith.constant 0 : index
    %c0_7 = arith.constant 0 : index
    %8 = vector.load %arg6[%c0_6, %c0_7] : memref<8x128xf32, #tpu.memory_space<vmem>>, vector<8x128xf32>
    tpu.vector_store %arg6[%c0_6, %c0_7], %7 {strides = array<i32>} : memref<8x128xf32, #tpu.memory_space<vmem>>, vector<8x128xf32>,
    %c0_i32_8 = arith.constant 0 : i32
    %9 = arith.cmpi eq, %arg2, %c0_i32_8 : i32
    %10 = arith.extui %9 : i1 to i32
    %c0_i32_9 = arith.constant 0 : i32
    %11 = arith.cmpi ne, %10, %c0_i32_9 : i32
    scf.if %11 {
      %c0_10 = arith.constant 0 : index
      %c0_11 = arith.constant 0 : index
      %12 = vector.load %arg6[%c0_10, %c0_11] : memref<8x128xf32, #tpu.memory_space<vmem>>, vector<8x128xf32>
      %c0_12 = arith.constant 0 : index
      %c0_13 = arith.constant 0 : index
      %13 = vector.load %arg5[%c0_12, %c0_13] : memref<1x128xf32, #tpu.memory_space<vmem>>, vector<1x128xf32>
      %14 = vector.broadcast %13 : vector<1x128xf32> to vector<8x128xf32>
      %15 = arith.addf %12, %14 : vector<8x128xf32>
      %cst_14 = arith.constant 0.000000e+00 : f32
      %16 = vector.broadcast %cst_14 : f32 to vector<8x128xf32>
      %17 = arith.maximumf %15, %16 : vector<8x128xf32>
      %c0_15 = arith.constant 0 : index
      %c0_16 = arith.constant 0 : index
      %18 = vector.load %arg6[%c0_15, %c0_16] : memref<8x128xf32, #tpu.memory_space<vmem>>, vector<8x128xf32>
      tpu.vector_store %arg6[%c0_15, %c0_16], %17 {strides = array<i32>} : memref<8x128xf32, #tpu.memory_space<vmem>>, vector<8x128xf32>,
    } else {
    }
    return
  }
  func.func @transform_0(%arg0: i32, %arg1: i32, %arg2: i32) -> (i32, i32) {
    %c0_i32 = arith.constant 0 : i32
    return %arg0, %arg2 : i32, i32
  }
  func.func @transform_1(%arg0: i32, %arg1: i32, %arg2: i32) -> (i32, i32) {
    %c0_i32 = arith.constant 0 : i32
    return %arg2, %arg1 : i32, i32
  }
  func.func @transform_2(%arg0: i32, %arg1: i32, %arg2: i32) -> (i32, i32) {
    %c0_i32 = arith.constant 0 : i32
    %c0_i32_0 = arith.constant 0 : i32
    return %c0_i32, %arg1 : i32, i32
  }
  func.func @transform_3(%arg0: i32, %arg1: i32, %arg2: i32) -> (i32, i32) {
    %c0_i32 = arith.constant 0 : i32
    return %arg0, %arg1 : i32, i32
  }
}

</mosaic_0001>

<bundles_post_ra>
// kernel: my_linear.1
= control target key start
LH: loop header
LB: loop body
LE: loop exit
PB: predicated region body
PF: predicated region fallthrough
CT: control target
= control target key end

     0   :  { %v207_v0 = vmov 0.0|0.0   ;;  %vm208_vm0 = vmmov 0   ;;  %v209_v4 = vmov 0.0   ;;  %s287_s1 = inlined_call_operand.vmem [shape: f32[128,128], index: 1, kind: input, shape index: {}]   ;;  %s288_s0 = inlined_call_operand.vmem [shape: f32[8,128], index: 0, kind: input, shape index: {}]   ;;  %s289_s2 = inlined_call_operand.vmem [shape: f32[1,128], index: 2, kind: input, shape index: {}]   ;;  %s290_s3 = inlined_call_operand.vmem [shape: f32[8,128], index: 3, kind: output, shape index: {}]  }
   0x1   :  { %180 = vmatprep.subr.bf16.mxu0 %v207_v0  ;;  %v21_v1 = vld [vmem:[%s287_s1] sm:$0xff]  ;;  %v22_v2 = vld [vmem:[%s287_s1 + $0x8] sm:$0xff]  ;;  %v23_v3 = vld [vmem:[%s287_s1 + $0x10] sm:$0xff]  ;;  %177 = vmatprep.mubr.msk.f32.mxu0 %vm208_vm0, %v209_v4 }
   0x2   :  { %v181_v5 = vpack.c.bf16 %v22_v2, %v21_v1  ;;  %v24_v6 = vld [vmem:[%s287_s1 + $0x18] sm:$0xff]  ;;  %v25_v8 = vld [vmem:[%s287_s1 + $0x20] sm:$0xff]  ;;  %v26_v9 = vld [vmem:[%s287_s1 + $0x28] sm:$0xff] }
   0x3   :  { %v184_v7 = vpack.c.bf16 %v24_v6, %v23_v3  ;;  %v187_v10 = vpack.c.bf16 %v26_v9, %v25_v8  ;;  %v27_v11 = vld [vmem:[%s287_s1 + $0x30] sm:$0xff]  ;;  %v28_v12 = vld [vmem:[%s287_s1 + $0x38] sm:$0xff]  ;;  %v29_v14 = vld [vmem:[%s287_s1 + $0x40] sm:$0xff] }
   0x4   :  { %182 = vmatpush3.bf16.msra.mxu0 %v181_v5  ;;  %v190_v13 = vpack.c.bf16 %v28_v12, %v27_v11  ;;  %v30_v15 = vld [vmem:[%s287_s1 + $0x48] sm:$0xff]  ;;  %v31_v17 = vld [vmem:[%s287_s1 + $0x50] sm:$0xff]  ;;  %v32_v18 = vld [vmem:[%s287_s1 + $0x58] sm:$0xff] }
   0x5   :  { %183 = vmatprep.subr.bf16.mxu0 %v207_v0  ;;  %v193_v16 = vpack.c.bf16 %v30_v15, %v29_v14  ;;  %v196_v19 = vpack.c.bf16 %v32_v18, %v31_v17  ;;  %v33_v20 = vld [vmem:[%s287_s1 + $0x60] sm:$0xff]  ;;  %v34_v21 = vld [vmem:[%s287_s1 + $0x68] sm:$0xff]  ;;  %v35_v23 = vld [vmem:[%s287_s1 + $0x70] sm:$0xff] }
   0x6   :  { %v199_v22 = vpack.c.bf16 %v34_v21, %v33_v20  ;;  %v36_v24 = vld [vmem:[%s287_s1 + $0x78] sm:$0xff]  ;;  %v20_v26 = vld [vmem:[%s288_s0] sm:$0xff] }
   0x7   :  { %v202_v25 = vpack.c.bf16 %v36_v24, %v35_v23  ;;  %v127_v28 = vld [vmem:[%s289_s2] ss:$0 sm:$0xff] }
   0x8   :  { %185 = vmatpush3.bf16.msra.mxu0 %v184_v7 }
   0x9   :  { %186 = vmatprep.subr.bf16.mxu0 %v207_v0 }
   0xc   :  { %188 = vmatpush3.bf16.msra.mxu0 %v187_v10 }
   0xd   :  { %189 = vmatprep.subr.bf16.mxu0 %v207_v0 }
  0x10   :  { %191 = vmatpush3.bf16.msra.mxu0 %v190_v13 }
  0x11   :  { %192 = vmatprep.subr.bf16.mxu0 %v207_v0 }
  0x14   :  { %194 = vmatpush3.bf16.msra.mxu0 %v193_v16 }
  0x15   :  { %195 = vmatprep.subr.bf16.mxu0 %v207_v0 }
  0x18   :  { %197 = vmatpush3.bf16.msra.mxu0 %v196_v19 }
  0x19   :  { %198 = vmatprep.subr.bf16.mxu0 %v207_v0 }
  0x1c   :  { %200 = vmatpush3.bf16.msra.mxu0 %v199_v22 }
  0x1d   :  { %201 = vmatprep.subr.bf16.mxu0 %v207_v0 }
  0x20   :  { %203 = vmatpush3.bf16.msra.mxu0 %v202_v25 }
  0x23   :  { %178 = vmatmul.mubr.f32.vlgmr.msra.gmra.mrb[0].mxu0 %v20_v26 }
  0xf6   :  { %v103_v27 = vpop.f32.mrb[0].mxu0 }
  0xf7   :  { %v179_v29 = vpop.f32.mrb[1].mxu0  ;;  %v120_v30 = vadd.f32 %v127_v28, %v103_v27 }
  0xf9   :  { %v121_v31 = vmax.f32 %v120_v30, 0.0 }
  0xfb   :  { %122 = vst [vmem:[%s290_s3] sm:$0xff] %v121_v31 }

</bundles_post_ra>
